<compile_context>
chip_gen: v5e
topology: v5e:2x2
jax: 0.10.0
libtpu: 0.0.40
codegen_flags: <defaults>
</compile_context>

<pallas_src>
import functools

import jax
import jax.numpy as jnp
from jax.experimental import pallas as pl
from jax.experimental.pallas import tpu as pltpu

# ScaledLossMixin: deterministic, default scale = 1.0 (no checkpoint load).
SCALE = 1.0

# Per-buffer budget for the two input tiles (Pallas double-buffers each input).
_TILE_BYTES_BUDGET = 8 * 1024 * 1024
_VMEM_LIMIT_BYTES = 40 * 1024 * 1024  # safe on v5e/v6e (128 MiB) and v7x (64 MiB)


def _pgs_kernel(disp_ref, pan_ref, sumx_ref, sumy_ref, dprev_ref, pprev_ref,
                *, th, height, width):
    """Accumulate masked |diff| sums for one (1, th, W) row-tile of a plane.

    disp_ref : (1, th, W) float VMEM block (native dtype, cast to f32 here)
    pan_ref  : (1, th, W) int   VMEM block (panoptic labels)
    sumx_ref : (1, 1, 1) f32 output block, resident across the H-tile axis
    sumy_ref : (1, 1, 1) f32 output block, resident across the H-tile axis
    dprev_ref: (1, W) f32 scratch -- carried last row of the previous tile
    pprev_ref: (1, W) int scratch -- carried last row of the previous tile
    """
    j = pl.program_id(1)

    d = disp_ref[0].astype(jnp.float32)          # (th, W)
    p = pan_ref[0]                               # (th, W)

    row = jax.lax.broadcasted_iota(jnp.int32, (th, width), 0)
    col = jax.lax.broadcasted_iota(jnp.int32, (th, width), 1)
    grow = j * th + row                          # global image row per element

    # ---- x direction (lanes) -------------------------------------------
    d_x = pltpu.roll(d, 1, 1)
    p_x = pltpu.roll(p, 1, 1)
    c_x = pltpu.roll(col, 1, 1)
    adj_x = jnp.abs(col - c_x) == 1              # true adjacent pairs only
    if width == 2:                               # size-2 roll duplicates the pair
        adj_x = adj_x & (col > c_x)
    keep_x = adj_x & (grow < height) & (p_x == p)
    sx = jnp.sum(jnp.where(keep_x, jnp.abs(d - d_x), 0.0))

    # ---- y direction (sublanes), pairs inside this tile -----------------
    d_y = pltpu.roll(d, 1, 0)
    p_y = pltpu.roll(p, 1, 0)
    r_y = pltpu.roll(row, 1, 0)
    adj_y = jnp.abs(row - r_y) == 1
    if th == 2:
        adj_y = adj_y & (row > r_y)
    keep_y = adj_y & ((j * th + jnp.maximum(row, r_y)) < height) & (p_y == p)
    sy = jnp.sum(jnp.where(keep_y, jnp.abs(d - d_y), 0.0))

    @pl.when(j == 0)
    def _init():
        sumx_ref[...] = jnp.zeros_like(sumx_ref)
        sumy_ref[...] = jnp.zeros_like(sumy_ref)

    sumx_ref[...] = sumx_ref[...] + sx
    sumy_ref[...] = sumy_ref[...] + sy

    # ---- y pair across the tile boundary (carried previous last row) ----
    @pl.when(j > 0)
    def _boundary():
        bd = d[0:1, :] - dprev_ref[...]
        keep_b = pprev_ref[...] == p[0:1, :]
        sumy_ref[...] = sumy_ref[...] + jnp.sum(
            jnp.where(keep_b, jnp.abs(bd), 0.0))

    # Carry the last row of this tile for the next tile of the same plane.
    # (Unused garbage when this is the plane's last tile: the next grid step
    #  starts at j == 0 and never reads it.)
    dprev_ref[...] = d[th - 1:th, :]
    pprev_ref[...] = p[th - 1:th, :]


def _choose_tile_rows(height, width, itemsize_sum):
    """Largest row-tile (multiple of 8, or full H) within the VMEM budget."""
    bytes_per_row = max(1, width * itemsize_sum)
    max_rows = max(8, _TILE_BYTES_BUDGET // bytes_per_row)
    if height <= max_rows:
        return height
    return int(max_rows // 8) * 8


@functools.partial(jax.jit, static_argnames=("tile_rows",))
def pgs_loss(disparity, panoptic, scale=SCALE, tile_rows=None):
    """disparity: (B, C, H, W) float; panoptic: (B, C, H, W) integer labels."""
    assert disparity.ndim == 4 and panoptic.shape == disparity.shape
    B, C, H, W = disparity.shape
    BC = B * C
    d = disparity.reshape(BC, H, W)
    p = panoptic.reshape(BC, H, W)

    if tile_rows is None:
        th = _choose_tile_rows(H, W, d.dtype.itemsize + p.dtype.itemsize)
    else:
        th = int(tile_rows)
        assert th == H or th % 8 == 0, "tile_rows must be H or a multiple of 8"
    grid_h = pl.cdiv(H, th)

    kernel = functools.partial(_pgs_kernel, th=th, height=H, width=W)

    partial_x, partial_y = pl.pallas_call(
        kernel,
        out_shape=(
            jax.ShapeDtypeStruct((BC, 1, 1), jnp.float32),
            jax.ShapeDtypeStruct((BC, 1, 1), jnp.float32),
        ),
        grid_spec=pltpu.PrefetchScalarGridSpec(
            num_scalar_prefetch=0,
            grid=(BC, grid_h),
            in_specs=[
                pl.BlockSpec((1, th, W), lambda i, j: (i, j, 0)),
                pl.BlockSpec((1, th, W), lambda i, j: (i, j, 0)),
            ],
            out_specs=[
                pl.BlockSpec((1, 1, 1), lambda i, j: (i, 0, 0)),
                pl.BlockSpec((1, 1, 1), lambda i, j: (i, 0, 0)),
            ],
            scratch_shapes=[
                pltpu.VMEM((1, W), jnp.float32),
                pltpu.VMEM((1, W), p.dtype),
            ],
        ),
        compiler_params=pltpu.CompilerParams(
            dimension_semantics=("parallel", "arbitrary"),
            vmem_limit_bytes=_VMEM_LIMIT_BYTES,
        ),
    )(d, p)

    # Means over the full diff tensors (matches torch.mean over all elements).
    n_x = BC * H * (W - 1)
    n_y = BC * (H - 1) * W
    loss_x = jnp.sum(partial_x) / n_x
    loss_y = jnp.sum(partial_y) / n_y
    return scale * (loss_x + loss_y)


def _pgs_loss_ref(disparity, panoptic, scale=SCALE):
    """Pure-JAX reference mirroring the PyTorch forward."""
    d = disparity.astype(jnp.float32)
    p = panoptic.astype(jnp.int32)
    pdx = (jnp.diff(p, axis=-1) != 0).astype(jnp.int32)
    pdy = (jnp.diff(p, axis=-2) != 0).astype(jnp.int32)
    ddx = jnp.diff(d, axis=-1)
    ddy = jnp.diff(d, axis=-2)
    loss_x = jnp.mean(jnp.abs(ddx) * (1 - pdx))
    loss_y = jnp.mean(jnp.abs(ddy) * (1 - pdy))
    return scale * (loss_x + loss_y)


if __name__ == "__main__":
    key = jax.random.PRNGKey(0)
    k1, k2, k3, k4 = jax.random.split(key, 4)

    # Primary small test (NCHW, like the PyTorch module).
    B, C, H, W = 2, 4, 16, 16
    disparity = jax.random.uniform(k1, (B, C, H, W), jnp.float32)
    panoptic = jax.random.randint(k2, (B, C, H, W), 0, 5, jnp.int32)
    out = jax.block_until_ready(pgs_loss(disparity, panoptic))
    ref = _pgs_loss_ref(disparity, panoptic)
    assert jnp.allclose(out, ref, rtol=1e-5, atol=1e-6), (out, ref)

    # Second check that exercises the H-tiling path: carried boundary row
    # between tiles and masking of a partial last tile (44 rows, tiles of 8).
    B2, C2, H2, W2 = 1, 2, 44, 128
    disparity2 = jax.random.uniform(k3, (B2, C2, H2, W2), jnp.float32)
    panoptic2 = jax.random.randint(k4, (B2, C2, H2, W2), 0, 7, jnp.int32)
    out2 = jax.block_until_ready(pgs_loss(disparity2, panoptic2, tile_rows=8))
    ref2 = _pgs_loss_ref(disparity2, panoptic2)
    assert jnp.allclose(out2, ref2, rtol=1e-5, atol=1e-6), (out2, ref2)

    print("KERNEL_OK")
</pallas_src>

<mosaic_0001>
module attributes {stable_mosaic.version = 11 : i64} {
  func.func @_pgs_kernel(%arg0: i32, %arg1: i32, %arg2: memref<1x16x16xf32, #tpu.memory_space<vmem>>, %arg3: memref<1x16x16xi32, #tpu.memory_space<vmem>>, %arg4: memref<1x1x1xf32, #tpu.memory_space<vmem>>, %arg5: memref<1x1x1xf32, #tpu.memory_space<vmem>>, %arg6: memref<1x16xf32, #tpu.memory_space<vmem>>, %arg7: memref<1x16xi32, #tpu.memory_space<vmem>>) attributes {dimension_semantics = [#tpu.dimension_semantics<parallel>, #tpu.dimension_semantics<arbitrary>], iteration_bounds = array<i64: 8, 1>, scalar_prefetch = 0 : i64, scratch_operands = 2 : i64, tpu.core_type = #tpu.core_type<tc>, window_params = [{transform_indices = @transform_0, window_bounds = array<i64: 1, 16, 16>}, {transform_indices = @transform_1, window_bounds = array<i64: 1, 16, 16>}, {transform_indices = @transform_2, window_bounds = array<i64: 1, 1, 1>}, {transform_indices = @transform_3, window_bounds = array<i64: 1, 1, 1>}]} {
    %c0 = arith.constant 0 : index
    %c0_0 = arith.constant 0 : index
    %c0_1 = arith.constant 0 : index
    %0 = vector.load %arg2[%c0, %c0_0, %c0_1] : memref<1x16x16xf32, #tpu.memory_space<vmem>>, vector<1x16x16xf32>
    %1 = vector.shape_cast %0 : vector<1x16x16xf32> to vector<16x16xf32>
    %c0_2 = arith.constant 0 : index
    %c0_3 = arith.constant 0 : index
    %c0_4 = arith.constant 0 : index
    %2 = vector.load %arg3[%c0_2, %c0_3, %c0_4] : memref<1x16x16xi32, #tpu.memory_space<vmem>>, vector<1x16x16xi32>
    %3 = vector.shape_cast %2 : vector<1x16x16xi32> to vector<16x16xi32>
    %4 = tpu.iota {dimensions = array<i32: 0>} : vector<16x16xi32>
    %5 = tpu.iota {dimensions = array<i32: 1>} : vector<16x16xi32>
    %c16_i32 = arith.constant 16 : i32
    %6 = arith.muli %arg1, %c16_i32 : i32
    %7 = vector.broadcast %6 : i32 to vector<16x16xi32>
    %8 = arith.addi %7, %4 : vector<16x16xi32>
    %c1_i32 = arith.constant 1 : i32
    %9 = tpu.dynamic_rotate %1 by %c1_i32 dim 1 : vector<16x16xf32>, i32 -> vector<16x16xf32>
    %c1_i32_5 = arith.constant 1 : i32
    %10 = tpu.dynamic_rotate %3 by %c1_i32_5 dim 1 : vector<16x16xi32>, i32 -> vector<16x16xi32>
    %c1_i32_6 = arith.constant 1 : i32
    %11 = tpu.dynamic_rotate %5 by %c1_i32_6 dim 1 : vector<16x16xi32>, i32 -> vector<16x16xi32>
    %12 = arith.subi %5, %11 : vector<16x16xi32>
    %13 = math.absi %12 : vector<16x16xi32>
    %c1_i32_7 = arith.constant 1 : i32
    %14 = vector.broadcast %c1_i32_7 : i32 to vector<16x16xi32>
    %15 = arith.cmpi eq, %13, %14 : vector<16x16xi32>
    %c16_i32_8 = arith.constant 16 : i32
    %16 = vector.broadcast %c16_i32_8 : i32 to vector<16x16xi32>
    %17 = arith.cmpi slt, %8, %16 : vector<16x16xi32>
    %18 = arith.andi %15, %17 : vector<16x16xi1>
    %19 = arith.cmpi eq, %10, %3 : vector<16x16xi32>
    %20 = arith.andi %18, %19 : vector<16x16xi1>
    %21 = arith.subf %1, %9 : vector<16x16xf32>
    %22 = math.absf %21 : vector<16x16xf32>
    %cst = arith.constant 0.000000e+00 : f32
    %23 = vector.broadcast %cst : f32 to vector<16x16xf32>
    %24 = arith.select %20, %22, %23 : vector<16x16xi1>, vector<16x16xf32>
    %25 = vector.shape_cast %24 : vector<16x16xf32> to vector<1x16x16xf32>
    %cst_9 = arith.constant dense<0.000000e+00> : vector<1xf32>
    %26 = vector.multi_reduction <add>, %25, %cst_9 [1, 2] : vector<1x16x16xf32> to vector<1xf32>
    %27 = vector.shape_cast %26 : vector<1xf32> to vector<1x1x1xf32>
    %28 = vector.extract %27[0, 0, 0] : f32 from vector<1x1x1xf32>
    %c1_i32_10 = arith.constant 1 : i32
    %29 = tpu.dynamic_rotate %1 by %c1_i32_10 dim 0 : vector<16x16xf32>, i32 -> vector<16x16xf32>
    %c1_i32_11 = arith.constant 1 : i32
    %30 = tpu.dynamic_rotate %3 by %c1_i32_11 dim 0 : vector<16x16xi32>, i32 -> vector<16x16xi32>
    %c1_i32_12 = arith.constant 1 : i32
    %31 = tpu.dynamic_rotate %4 by %c1_i32_12 dim 0 : vector<16x16xi32>, i32 -> vector<16x16xi32>
    %32 = arith.subi %4, %31 : vector<16x16xi32>
    %33 = math.absi %32 : vector<16x16xi32>
    %c1_i32_13 = arith.constant 1 : i32
    %34 = vector.broadcast %c1_i32_13 : i32 to vector<16x16xi32>
    %35 = arith.cmpi eq, %33, %34 : vector<16x16xi32>
    %c16_i32_14 = arith.constant 16 : i32
    %36 = arith.muli %arg1, %c16_i32_14 : i32
    %37 = arith.maxsi %4, %31 : vector<16x16xi32>
    %38 = vector.broadcast %36 : i32 to vector<16x16xi32>
    %39 = arith.addi %38, %37 : vector<16x16xi32>
    %c16_i32_15 = arith.constant 16 : i32
    %40 = vector.broadcast %c16_i32_15 : i32 to vector<16x16xi32>
    %41 = arith.cmpi slt, %39, %40 : vector<16x16xi32>
    %42 = arith.andi %35, %41 : vector<16x16xi1>
    %43 = arith.cmpi eq, %30, %3 : vector<16x16xi32>
    %44 = arith.andi %42, %43 : vector<16x16xi1>
    %45 = arith.subf %1, %29 : vector<16x16xf32>
    %46 = math.absf %45 : vector<16x16xf32>
    %cst_16 = arith.constant 0.000000e+00 : f32
    %47 = vector.broadcast %cst_16 : f32 to vector<16x16xf32>
    %48 = arith.select %44, %46, %47 : vector<16x16xi1>, vector<16x16xf32>
    %49 = vector.shape_cast %48 : vector<16x16xf32> to vector<1x16x16xf32>
    %cst_17 = arith.constant dense<0.000000e+00> : vector<1xf32>
    %50 = vector.multi_reduction <add>, %49, %cst_17 [1, 2] : vector<1x16x16xf32> to vector<1xf32>
    %51 = vector.shape_cast %50 : vector<1xf32> to vector<1x1x1xf32>
    %52 = vector.extract %51[0, 0, 0] : f32 from vector<1x1x1xf32>
    %c0_i32 = arith.constant 0 : i32
    %53 = arith.cmpi eq, %arg1, %c0_i32 : i32
    %54 = arith.extui %53 : i1 to i32
    %c0_i32_18 = arith.constant 0 : i32
    %55 = arith.cmpi ne, %54, %c0_i32_18 : i32
    scf.if %55 {
      %cst_37 = arith.constant 0.000000e+00 : f32
      %71 = vector.broadcast %cst_37 : f32 to vector<1x1x1xf32>
      %c0_38 = arith.constant 0 : index
      %c0_39 = arith.constant 0 : index
      %c0_40 = arith.constant 0 : index
      %72 = vector.load %arg4[%c0_38, %c0_39, %c0_40] : memref<1x1x1xf32, #tpu.memory_space<vmem>>, vector<1x1x1xf32>
      tpu.vector_store %arg4[%c0_38, %c0_39, %c0_40], %71 {strides = array<i32>} : memref<1x1x1xf32, #tpu.memory_space<vmem>>, vector<1x1x1xf32>,
      %cst_41 = arith.constant 0.000000e+00 : f32
      %73 = vector.broadcast %cst_41 : f32 to vector<1x1x1xf32>
      %c0_42 = arith.constant 0 : index
      %c0_43 = arith.constant 0 : index
      %c0_44 = arith.constant 0 : index
      %74 = vector.load %arg5[%c0_42, %c0_43, %c0_44] : memref<1x1x1xf32, #tpu.memory_space<vmem>>, vector<1x1x1xf32>
      tpu.vector_store %arg5[%c0_42, %c0_43, %c0_44], %73 {strides = array<i32>} : memref<1x1x1xf32, #tpu.memory_space<vmem>>, vector<1x1x1xf32>,
    } else {
    }
    %c0_19 = arith.constant 0 : index
    %c0_20 = arith.constant 0 : index
    %c0_21 = arith.constant 0 : index
    %56 = vector.load %arg4[%c0_19, %c0_20, %c0_21] : memref<1x1x1xf32, #tpu.memory_space<vmem>>, vector<1x1x1xf32>
    %57 = vector.broadcast %28 : f32 to vector<1x1x1xf32>
    %58 = arith.addf %56, %57 : vector<1x1x1xf32>
    %c0_22 = arith.constant 0 : index
    %c0_23 = arith.constant 0 : index
    %c0_24 = arith.constant 0 : index
    %59 = vector.load %arg4[%c0_22, %c0_23, %c0_24] : memref<1x1x1xf32, #tpu.memory_space<vmem>>, vector<1x1x1xf32>
    tpu.vector_store %arg4[%c0_22, %c0_23, %c0_24], %58 {strides = array<i32>} : memref<1x1x1xf32, #tpu.memory_space<vmem>>, vector<1x1x1xf32>,
    %c0_25 = arith.constant 0 : index
    %c0_26 = arith.constant 0 : index
    %c0_27 = arith.constant 0 : index
    %60 = vector.load %arg5[%c0_25, %c0_26, %c0_27] : memref<1x1x1xf32, #tpu.memory_space<vmem>>, vector<1x1x1xf32>
    %61 = vector.broadcast %52 : f32 to vector<1x1x1xf32>
    %62 = arith.addf %60, %61 : vector<1x1x1xf32>
    %c0_28 = arith.constant 0 : index
    %c0_29 = arith.constant 0 : index
    %c0_30 = arith.constant 0 : index
    %63 = vector.load %arg5[%c0_28, %c0_29, %c0_30] : memref<1x1x1xf32, #tpu.memory_space<vmem>>, vector<1x1x1xf32>
    tpu.vector_store %arg5[%c0_28, %c0_29, %c0_30], %62 {strides = array<i32>} : memref<1x1x1xf32, #tpu.memory_space<vmem>>, vector<1x1x1xf32>,
    %c0_i32_31 = arith.constant 0 : i32
    %64 = arith.cmpi sgt, %arg1, %c0_i32_31 : i32
    %65 = arith.extui %64 : i1 to i32
    %c0_i32_32 = arith.constant 0 : i32
    %66 = arith.cmpi ne, %65, %c0_i32_32 : i32
    scf.if %66 {
      %71 = vector.extract_strided_slice %1 {offsets = [0, 0], sizes = [1, 16], strides = [1, 1]} : vector<16x16xf32> to vector<1x16xf32>
      %c0_37 = arith.constant 0 : index
      %c0_38 = arith.constant 0 : index
      %72 = vector.load %arg6[%c0_37, %c0_38] : memref<1x16xf32, #tpu.memory_space<vmem>>, vector<1x16xf32>
      %73 = arith.subf %71, %72 : vector<1x16xf32>
      %c0_39 = arith.constant 0 : index
      %c0_40 = arith.constant 0 : index
      %74 = vector.load %arg7[%c0_39, %c0_40] : memref<1x16xi32, #tpu.memory_space<vmem>>, vector<1x16xi32>
      %75 = vector.extract_strided_slice %3 {offsets = [0, 0], sizes = [1, 16], strides = [1, 1]} : vector<16x16xi32> to vector<1x16xi32>
      %76 = arith.cmpi eq, %74, %75 : vector<1x16xi32>
      %c0_41 = arith.constant 0 : index
      %c0_42 = arith.constant 0 : index
      %c0_43 = arith.constant 0 : index
      %77 = vector.load %arg5[%c0_41, %c0_42, %c0_43] : memref<1x1x1xf32, #tpu.memory_space<vmem>>, vector<1x1x1xf32>
      %78 = math.absf %73 : vector<1x16xf32>
      %cst_44 = arith.constant 0.000000e+00 : f32
      %79 = vector.broadcast %cst_44 : f32 to vector<1x16xf32>
      %80 = arith.select %76, %78, %79 : vector<1x16xi1>, vector<1x16xf32>
      %81 = vector.shape_cast %80 : vector<1x16xf32> to vector<1x1x16xf32>
      %cst_45 = arith.constant dense<0.000000e+00> : vector<1xf32>
      %82 = vector.multi_reduction <add>, %81, %cst_45 [1, 2] : vector<1x1x16xf32> to vector<1xf32>
      %83 = vector.shape_cast %82 : vector<1xf32> to vector<1x1x1xf32>
      %84 = vector.extract %83[0, 0, 0] : f32 from vector<1x1x1xf32>
      %85 = vector.broadcast %84 : f32 to vector<1x1x1xf32>
      %86 = arith.addf %77, %85 : vector<1x1x1xf32>
      %c0_46 = arith.constant 0 : index
      %c0_47 = arith.constant 0 : index
      %c0_48 = arith.constant 0 : index
      %87 = vector.load %arg5[%c0_46, %c0_47, %c0_48] : memref<1x1x1xf32, #tpu.memory_space<vmem>>, vector<1x1x1xf32>
      tpu.vector_store %arg5[%c0_46, %c0_47, %c0_48], %86 {strides = array<i32>} : memref<1x1x1xf32, #tpu.memory_space<vmem>>, vector<1x1x1xf32>,
    } else {
    }
    %67 = vector.extract_strided_slice %1 {offsets = [15, 0], sizes = [1, 16], strides = [1, 1]} : vector<16x16xf32> to vector<1x16xf32>
    %c0_33 = arith.constant 0 : index
    %c0_34 = arith.constant 0 : index
    %68 = vector.load %arg6[%c0_33, %c0_34] : memref<1x16xf32, #tpu.memory_space<vmem>>, vector<1x16xf32>
    tpu.vector_store %arg6[%c0_33, %c0_34], %67 {strides = array<i32>} : memref<1x16xf32, #tpu.memory_space<vmem>>, vector<1x16xf32>,
    %69 = vector.extract_strided_slice %3 {offsets = [15, 0], sizes = [1, 16], strides = [1, 1]} : vector<16x16xi32> to vector<1x16xi32>
    %c0_35 = arith.constant 0 : index
    %c0_36 = arith.constant 0 : index
    %70 = vector.load %arg7[%c0_35, %c0_36] : memref<1x16xi32, #tpu.memory_space<vmem>>, vector<1x16xi32>
    tpu.vector_store %arg7[%c0_35, %c0_36], %69 {strides = array<i32>} : memref<1x16xi32, #tpu.memory_space<vmem>>, vector<1x16xi32>,
    return
  }
  func.func @transform_0(%arg0: i32, %arg1: i32) -> (i32, i32, i32) {
    %c0_i32 = arith.constant 0 : i32
    %c0_i32_0 = arith.constant 0 : i32
    return %arg0, %arg1, %c0_i32 : i32, i32, i32
  }
  func.func @transform_1(%arg0: i32, %arg1: i32) -> (i32, i32, i32) {
    %c0_i32 = arith.constant 0 : i32
    %c0_i32_0 = arith.constant 0 : i32
    return %arg0, %arg1, %c0_i32 : i32, i32, i32
  }
  func.func @transform_2(%arg0: i32, %arg1: i32) -> (i32, i32, i32) {
    %c0_i32 = arith.constant 0 : i32
    %c0_i32_0 = arith.constant 0 : i32
    %c0_i32_1 = arith.constant 0 : i32
    return %arg0, %c0_i32, %c0_i32_0 : i32, i32, i32
  }
  func.func @transform_3(%arg0: i32, %arg1: i32) -> (i32, i32, i32) {
    %c0_i32 = arith.constant 0 : i32
    %c0_i32_0 = arith.constant 0 : i32
    %c0_i32_1 = arith.constant 0 : i32
    return %arg0, %c0_i32, %c0_i32_0 : i32, i32, i32
  }
}

</mosaic_0001>

<bundles_post_ra>
// kernel: pgs_loss.1
= control target key start
LH: loop header
LB: loop body
LE: loop exit
PB: predicated region body
PF: predicated region fallthrough
CT: control target
= control target key end

     0   :  { %9 = vsyncpa [#allocation5], 0  ;;  %s980_s0 = inlined_call_operand.hbm [shape: f32[8,16,16], index: 0, kind: input, shape index: {}]   ;;  %s981_s1 = inlined_call_operand.hbm [shape: s32[8,16,16], index: 1, kind: input, shape index: {}]   ;;  %s982_s2 = inlined_call_operand.vmem [shape: f32[8,1,1], index: 2, kind: output, shape index: {0}]   ;;  %s983_s3 = inlined_call_operand.vmem [shape: f32[8,1,1], index: 3, kind: output, shape index: {1}]  }
   0x1   :  { %11 = vsyncpa [#allocation5 + $0x1], 0 }
   0x2   :  { %12 = vsyncpa [#allocation7], 0 }
   0x3   :  { %14 = vsyncpa [#allocation7 + $0x1], 0  ;;  %s811_s12 = smov 0   ;;  %s813_s13 = smov 0  }
   0x4   :  { %s815_s14 = smov 0   ;;  %s817_s15 = smov 0  }
   0x5   :  { %s819_s16 = smov 0   ;;  %s821_s17 = smov 0  }
   0x6 LB: > { %s580_s18 = sadd.s32 4294967295, %s782_s17   ;;  %s32_s19 = sadd.s32 1, %s778_s16  ;;  %s782_s17 = sphi %s821_s17, %s20_s17   ;;  %s778_s16 = sphi %s819_s16, %s991_s16   ;;  %s774_s15 = sphi %s817_s15, %s990_s15   ;;  %s770_s14 = sphi %s815_s14, %s989_s14   ;;  %s766_s13 = sphi %s813_s13, %s988_s13   ;;  %s762_s12 = sphi %s811_s12, %s987_s12  }
   0x7   : > { %p34_p0 = scmp.ge.s32.totalorder %s32_s19, 8  ;;  %s41_s20 = sadd.s32 1, %s770_s14 }
   0x8   : > { %p48_p1 = scmp.ne.s32.totalorder %s770_s14, %s766_s13  ;;  %p49_p2 = scmp.eq.s32.totalorder %s782_s17, 0 }
   0x9   : > { %s993_s19 = smov (%p34_p0, %s32_s19), 0  ;;  %p54_p4 = scmp.ne.s32.totalorder %s766_s13, %s762_s12 }
   0xa   : > { %p847_p3 = por %p49_p2, %p48_p1  ;;  %s36_s22 = ssub.s32 %s778_s16, %s993_s19 }
   0xb   : > { %p55_p5 = scmp.eq.s32.totalorder %s580_s18, 0  ;;  %p39_p6 = scmp.eq.s32.totalorder %s36_s22, 0 }
   0xc   : > { %p612_p8 = scmp.lt.s32.totalorder %s782_s17, 8  ;;  %s863_s25 = sand.u32 1, %s770_s14  }
   0xd   : > { %p854_p7 = por %p55_p5, %p54_p4  ;;  %s595_s26 = sshll.u32 %s778_s16, 4 }
   0xe   : > { %s860_s24 = scalar_select %p39_p6, %s770_s14, %s41_s20  }
   0xf   : > { %s584_s27 = sshll.u32 %s863_s25, 4  ;;  %s169_s30 = scalar_lea.hbm %s980_s0, %s595_s26 }
  0x10   : > { %s170_s4 = sshll.u32 %s169_s30, 4  ;;  %s162_s5 = scalar_lea.vmem [#allocation4], %s584_s27  ;;  %s171_s4 = int_to_ptr.hbm [resolvable:$true] %s170_s4 }
  0x11   : > { %s172_s6 = sshll.u32 %s162_s5, 4  ;;  %p872_p9 = pnand %p612_p8, %p847_p3  ;;  %s173_s6 = int_to_ptr.vmem [resolvable:$true] %s172_s6 }
  0x12   : > { %p590_p10 = scmp.ge.s32.totalorder %s782_s17, 1  ;;  %p204_p11 = scmp.lt.s32.totalorder %s782_s17, 9 }
  0x13   : > { %s159_s8 = scalar_lea.sflag [#allocation5], %s863_s25  ;;  %s784_s9 = smov 128  }
  0x14   : > { %s785_s10 = smov 8   ;;  %p205_p12 = pnand %p590_p10, %p204_p11 }
  0x15   : > { %608 = dma.hbm_to_vmem [thread:$0]  (!%p872_p9), %s171_s4, 256, %s173_s6, %s159_s8, %s784_s9, %s784_s9, %s785_s10  }
  0x16   : > { %s193_s18 = scalar_lea.hbm %s981_s1, %s595_s26  ;;  %s186_s21 = scalar_lea.vmem [#allocation6], %s584_s27 }
  0x17   : > { %s194_s20 = sshll.u32 %s193_s18, 4  ;;  %s196_s22 = sshll.u32 %s186_s21, 4  ;;  %s195_s20 = int_to_ptr.hbm [resolvable:$true] %s194_s20  ;;  %s197_s22 = int_to_ptr.vmem [resolvable:$true] %s196_s22 }
  0x18   : > { %s183_s28 = scalar_lea.sflag [#allocation7], %s863_s25  ;;  %208 = sbr.rel (%p205_p12) target bundleno = 590 (0x24e), region = 28 }
  0x19   : > { %611 = dma.hbm_to_vmem [thread:$0]  (!%p872_p9), %s195_s20, 256, %s197_s22, %s183_s28, %s784_s9, %s784_s9, %s785_s10  }
  0x1a   : > { %s210_s29 = sand.u32 (!%p205_p12), 1, %s766_s13  }
  0x1b   : > { %s591_s30 = sshll.u32 (!%p205_p12), %s210_s29, 4  ;;  %s211_s5 = scalar_lea.sflag (!%p205_p12), [#allocation5], %s210_s29 }
  0x1c   : > { %s214_s4 = scalar_lea.vmem (!%p205_p12), [#allocation4], %s591_s30 }
  0x1d   : > { %753 = dma.done.wait (%p854_p7), %s211_s5, 256  }
  0x1e   : > { %755 = vsyncadd (%p854_p7), %s211_s5, 4294967040  ;;  %s221_s26 = scalar_lea.sflag [#allocation7], %s210_s29  ;;  %s224_s27 = scalar_lea.vmem [#allocation6], %s591_s30 }
  0x1f   : > { %757 = dma.done.wait (%p854_p7), %s221_s26, 256  }
  0x20   : > { %759 = vsyncadd (%p854_p7), %s221_s26, 4294967040  ;;  %v266_v0 = vlaneseq  ;;  %s786_s25 = smov 16   ;;  %v899_v2 = vld [vmem:[%s214_s4 + $0x8] sm:$0xff]  ;;  %v904_v4 = vld [vmem:[%s214_s4] sm:$0xff]  ;;  %vm275_vm0 = vcmask 1047680   ;;  %s787_s23 = smov 15  }
  0x21   : > { %279 = vrot.lane.b32.xlu1 %v899_v2, %s786_s25  ;;  %v902_v3 = vld [vmem:[%s224_s27 + $0x8] sm:$0xff]  ;;  %v908_v5 = vld [vmem:[%s224_s27] sm:$0xff]  ;;  %s788_s6 = smov 113   ;;  %v789_v25 = vmov 0   ;;  %v360_v39 = vrot.slane %v904_v4, 7  ;;  %v361_v40 = vrot.slane %v899_v2, 7 }
  0x22   : > { %v896_v1 = vand.u32 127, %v266_v0  ;;  %291 = vrot.lane.b32.xlu2 %v902_v3, %s786_s25  ;;  %v267_v31 = vshrl.u32 %v266_v0, 7  ;;  %v365_v43 = vrot.slane %v908_v5, 7  ;;  %v366_v44 = vrot.slane %v902_v3, 7  ;;  %p256_p13 = scmp.lt.s32.totalorder %s774_s15, 7 }
  0x23   : > { %vm347_vm15 = vcmask 130048  }
  0x24   : > { %300 = vrot.lane.b32.xlu0 %v896_v1, %s786_s25  ;;  %v268_v32 = vadd.s32 8, %v267_v31  ;;  %v369_v33 = vrot.slane %v267_v31, 7  ;;  %vm362_vm3 = vcmp.lt.s32.totalorder %v267_v31, 1  ;;  %s995_s15 = smov (!%p256_p13, %s774_s15), 7 }
  0x25   : > { %v363_v47 = vsel %vm362_vm3, %v360_v39, %v361_v40  ;;  %v364_v48 = vsel %vm362_vm3, %v361_v40, %v360_v39  ;;  %v368_v49 = vsel %vm362_vm3, %v366_v44, %v365_v43  ;;  %v367_v50 = vsel %vm362_vm3, %v365_v43, %v366_v44  ;;  %s258_s9 = scalar_lea.vmem %s982_s2, %s995_s15  ;;  %s261_s12 = scalar_lea.vmem %s983_s3, %s995_s15 }
  0x26   : > { %v370_v34 = vrot.slane %v268_v32, 7  ;;  %vm393_vm12 = vcmp.eq.s32.totalorder %v368_v49, %v908_v5  ;;  %v397_v53 = vsub.f32 %v904_v4, %v364_v48  ;;  %vm394_vm14 = vcmp.eq.s32.totalorder %v367_v50, %v902_v3 }
  0x27   : > { %v398_v54 = vsub.f32 %v899_v2, %v363_v47 }
  0x28   : > { %v371_v35 = vsel %vm362_vm3, %v369_v33, %v370_v34  ;;  %v372_v36 = vsel %vm362_vm3, %v370_v34, %v369_v33  ;;  %v399_v55 = vand.u32 2147483647, %v397_v53 }
  0x29   : > { %288 = vrot.lane.b32.xlu1 %v908_v5, %s786_s25  ;;  %v373_v37 = vsub.s32 %v267_v31, %v372_v36  ;;  %v374_v38 = vsub.s32 %v268_v32, %v371_v35  ;;  %vm383_vm7 = vcmp.gt.s32.totalorder %v267_v31, %v372_v36  ;;  %vm385_vm8 = vcmp.gt.s32.totalorder %v268_v32, %v371_v35 }
  0x2a   : > { %v384_v51 = vsel %vm383_vm7, %v267_v31, %v372_v36  ;;  %v386_v52 = vsel %vm385_vm8, %v268_v32, %v371_v35  ;;  %v400_v56 = vand.u32 2147483647, %v398_v54 }
  0x2b   : > { %v376_v41 = vsub.s32 0, %v373_v37  ;;  %v379_v42 = vsub.s32 0, %v374_v38  ;;  %vm375_vm4 = vcmp.lt.s32.totalorder %v373_v37, 0  ;;  %vm378_vm5 = vcmp.lt.s32.totalorder %v374_v38, 0 }
  0x2c   : > { %276 = vrot.lane.b32.xlu0 %v904_v4, %s786_s25  ;;  %vm389_vm10 = vcmp.lt.s32.totalorder %v384_v51, 16  ;;  %vm390_vm11 = vcmp.lt.s32.totalorder %v386_v52, 16 }
  0x2d   : > { %v377_v45 = vsel %vm375_vm4, %v376_v41, %v373_v37  ;;  %v380_v46 = vsel %vm378_vm5, %v379_v42, %v374_v38 }
  0x2e   : > { %vm381_vm6 = vcmp.eq.s32.totalorder %v377_v45, 1  ;;  %vm382_vm9 = vcmp.eq.s32.totalorder %v380_v46, 1 }
  0x2f   : > { %vm391_vm13 = vmand %vm381_vm6, %vm389_vm10 }
  0x7c   : > { %v292_v12 = vpop.permute.xlu2 %291 }
  0x7d   : > { %v293_v15 = vsel %vm275_vm0, %v292_v12, %v902_v3 }
  0x93   : > { %v280_v8 = vpop.permute.xlu1 %279 }
  0x94   : > { %v281_v9 = vsel %vm275_vm0, %v280_v8, %v899_v2 }
  0x95   : > { %284 = vrot.lane.b32.xlu1 %v281_v9, %s786_s25 }
  0x96   : > { %v301_v6 = vpop.permute.xlu0 %300 }
  0x97   : > { %v302_v7 = vsel %vm275_vm0, %v301_v6, %v896_v1 }
  0x98   : > { %303 = vrot.lane.b32.xlu2 %v302_v7, %s786_s25 }
  0x9b   : > { %v289_v13 = vpop.permute.xlu1 %288 }
  0x9c   : > { %v290_v14 = vsel %vm275_vm0, %v289_v13, %v908_v5 }
  0x9d   : > { %317 = vrot.lane.b32.xlu1 %v908_v5, %s787_s23 }
  0x9e   : > { %v277_v10 = vpop.permute.xlu0 %276 }
  0x9f   : > { %v278_v11 = vsel %vm275_vm0, %v277_v10, %v904_v4 }
  0xa0   : > { %282 = vrot.lane.b32.xlu0 %v278_v11, %s786_s25  ;;  %294 = vrot.lane.b32.xlu2 %v290_v14, %s786_s25 }
  0xa8   : > { %296 = vrot.lane.b32.xlu0 %v293_v15, %s786_s25  ;;  %319 = vrot.lane.b32.xlu2 %v902_v3, %s787_s23 }
  0xf2   : > { %v304_v16 = vpop.permute.xlu2 %303 }
  0xf3   : > { %v305_v17 = vsel %vm275_vm0, %v304_v16, %v896_v1 }
  0xf4   : > { %306 = vrot.lane.b32.xlu0 %v305_v17, %s788_s6 }
  0xfa   : > { %v295_v19 = vpop.permute.xlu2 %294 }
  0xfb   : > { %v298_v23 = vsel %vm275_vm0, %v295_v19, %v908_v5 }
 0x102   : > { %v320_v27 = vpop.permute.xlu2 %319 }
 0x107   : > { %v285_v18 = vpop.permute.xlu1 %284 }
 0x108   : > { %v287_v20 = vsel %vm275_vm0, %v285_v18, %v899_v2 }
 0x109   : > { %337 = vrot.lane.b32.xlu2 %v287_v20, %s788_s6 }
 0x10f   : > { %v318_v24 = vpop.permute.xlu1 %317 }
 0x110   : > { %vm321_vm1 = vcmp.eq.s32.totalorder %v298_v23, %v318_v24 }
 0x111   : > { %v323_v26 = vsel %vm321_vm1, 1, %v789_v25  ;;  %vm395_vm1 = vmand %vm391_vm13, %vm393_vm12 }
 0x112   : > { %v283_v21 = vpop.permute.xlu0 %282  ;;  %325 = vrot.lane.b32.xlu0 %v323_v26, %s788_s6  ;;  %v401_v57 = vsel %vm395_vm1, %v399_v55, 0.0 }
 0x113   : > { %v286_v22 = vsel %vm275_vm0, %v283_v21, %v904_v4  ;;  %v403_v59 = vsel %vm347_vm15, %v401_v57, 0.0 }
 0x114   : > { %335 = vrot.lane.b32.xlu1 %v286_v22, %s788_s6 }
 0x11a   : > { %v297_v28 = vpop.permute.xlu0 %296 }
 0x11b   : > { %v299_v29 = vsel %vm275_vm0, %v297_v28, %v902_v3  ;;  %vm392_vm0 = vmand %vm382_vm9, %vm390_vm11  ;;  %vm419_vm9 = vcmask 0  }
 0x11c   : > { %vm322_vm2 = vcmp.eq.s32.totalorder %v299_v29, %v320_v27  ;;  %v790_v29 = vmov 0.0  }
 0x11d   : > { %v324_v30 = vsel %vm322_vm2, 1, %v789_v25  ;;  %vm396_vm2 = vmand %vm392_vm0, %vm394_vm14  ;;  %420 = vst.msk [vmem:[%s258_s9] sm:$0x1] %vm419_vm9, %v790_v29 }
 0x11e   : > { %327 = vrot.lane.b32.xlu1 %v324_v30, %s788_s6  ;;  %v402_v58 = vsel %vm396_vm2, %v400_v56, 0.0  ;;  %421 = vst.msk [vmem:[%s261_s12] sm:$0x1] %vm419_vm9, %v790_v29 }
 0x11f   : > { %v404_v60 = vsel %vm347_vm15, %v402_v58, 0.0 }
 0x120   : > { %v405_v61 = vadd.f32 %v404_v60, %v403_v59 }
 0x124   : > { %v422_v30 = vld [vmem:[%s258_s9] sm:$0x1] }
 0x125   : > { %v427_v31 = vld [vmem:[%s261_s12] sm:$0x1] }
 0x13c   : > { %406 = vadd.xlane.f32.xlu0 %v405_v61 }
 0x163   : > { %v338_v5 = vpop.permute.xlu2 %337 }
 0x164   : > { %v342_v9 = vsub.f32 %v899_v2, %v338_v5 }
 0x166   : > { %v307_v62 = vpop.permute.xlu0 %306  ;;  %v344_v12 = vand.u32 2147483647, %v342_v9 }
 0x167   : > { %v308_v63 = vsub.s32 %v896_v1, %v307_v62 }
 0x169   : > { %v310_v0 = vsub.s32 0, %v308_v63  ;;  %vm309_vm3 = vcmp.lt.s32.totalorder %v308_v63, 0 }
 0x16b   : > { %v311_v6 = vsel %vm309_vm3, %v310_v0, %v308_v63 }
 0x16c   : > { %vm312_vm5 = vcmp.eq.s32.totalorder %v311_v6, 1 }
 0x184   : > { %v326_v8 = vpop.permute.xlu0 %325 }
 0x185   : > { %vm329_vm4 = vcmp.ne.s32.totalorder %v326_v8, 0 }
 0x186   : > { %v336_v3 = vpop.permute.xlu1 %335  ;;  %vm331_vm6 = vmand %vm312_vm5, %vm329_vm4 }
 0x187   : > { %v341_v7 = vsub.f32 %v904_v4, %v336_v3 }
 0x189   : > { %v343_v10 = vand.u32 2147483647, %v341_v7 }
 0x18b   : > { %v345_v13 = vsel %vm331_vm6, %v343_v10, 0.0 }
 0x18c   : > { %v348_v14 = vsel %vm347_vm15, %v345_v13, 0.0 }
 0x190   : > { %v328_v11 = vpop.permute.xlu1 %327 }
 0x191   : > { %vm330_vm7 = vcmp.ne.s32.totalorder %v328_v11, 0 }
 0x192   : > { %vm332_vm8 = vmand %vm312_vm5, %vm330_vm7 }
 0x193   : > { %v346_v1 = vsel %vm332_vm8, %v344_v12, 0.0 }
 0x194   : > { %v349_v15 = vsel %vm347_vm15, %v346_v1, 0.0 }
 0x195   : > { %v350_v16 = vadd.f32 %v349_v15, %v348_v14 }
 0x197   : > { %351 = vadd.xlane.f32.xlu2 %v350_v16 }
 0x1af   : > { %v407_v4 = vpop.xlane.xlu0 %406 }
 0x1b0   : > { %v408_v17 = vrot.slane %v407_v4, 4 }
 0x1b2   : > { %v409_v2 = vadd.f32 %v408_v17, %v407_v4 }
 0x1b4   : > { %v410_v18 = vrot.slane %v409_v2, 2 }
 0x1b6   : > { %v411_v22 = vadd.f32 %v410_v18, %v409_v2 }
 0x1b8   : > { %v412_v25 = vrot.slane %v411_v22, 1 }
 0x1ba   : > { %v413_v28 = vadd.f32 %v412_v25, %v411_v22 }
 0x20a   : > { %v352_v19 = vpop.xlane.xlu2 %351 }
 0x20b   : > { %v353_v20 = vrot.slane %v352_v19, 4 }
 0x20d   : > { %v354_v21 = vadd.f32 %v353_v20, %v352_v19 }
 0x20f   : > { %v355_v23 = vrot.slane %v354_v21, 2 }
 0x211   : > { %v356_v24 = vadd.f32 %v355_v23, %v354_v21 }
 0x213   : > { %v357_v26 = vrot.slane %v356_v24, 1 }
 0x215   : > { %v358_v27 = vadd.f32 %v357_v26, %v356_v24 }
 0x217   : > { %597 = vpush %v358_v27 }
 0x218   : > { %599 = vpush %v413_v28 }
 0x248   : > { %s598_s18 = spop %597 }
 0x249   : > { %v423_v32 = vstv %s598_s18  ;;  %s600_s20 = spop %599 }
 0x24a   : > { %v424_v33 = vadd.f32 %v423_v32, %v422_v30  ;;  %v428_v34 = vstv %s600_s20 }
 0x24b   : > { %v429_v35 = vadd.f32 %v428_v34, %v427_v31 }
 0x24c   : > { %426 = vst.msk [vmem:[%s258_s9] sm:$0x1] %vm419_vm9, %v424_v33 }
 0x24d   : > { %430 = vst.msk [vmem:[%s261_s12] sm:$0x1] %vm419_vm9, %v429_v35 }
 0x24e PF: > { %s20_s17 = sadd.s32 1, %s782_s17   ;;  %s987_s12 = smov %s766_s13 }
 0x24f   : > { %p17_p0 = scmp.ge.s32.totalorder %s20_s17, 10   ;;  %s988_s13 = smov %s770_s14 }
 0x250   : > { %s989_s14 = smov %s860_s24  ;;  %s990_s15 = smov %s778_s16 }
 0x251   : > { %s991_s16 = smov %s993_s19  ;;  %19 = sbr.rel (!%p17_p0) target bundleno = 6 (0x6), region = 101 }
 0x256   :  { %488 = vsyncpa [#allocation5], 1 }
 0x257   :  { %490 = vsyncpa [#allocation5 + $0x1], 1 }
 0x258   :  { %491 = vsyncpa [#allocation7], 1 }
 0x259   :  { %493 = vsyncpa [#allocation7 + $0x1], 1 }

</bundles_post_ra>
